<compile_context>
chip_gen: v7x
topology: tpu7x:2x2x1
jax: 0.10.0
libtpu: 0.0.40
codegen_flags: <defaults>
</compile_context>

<pallas_src>
import jax
import jax.numpy as jnp
from jax.experimental import pallas as pl
from jax.experimental.pallas import tpu as pltpu


def _cdiv(a, b):
    return -(-a // b)


def _round_up(a, m):
    return _cdiv(a, m) * m


def _sage_kernel(adj_ref, a_src_ref, a_dst_ref, x_src_ref, x_dst_ref, wf_ref, o_ref):
    # Edge gates for this destination tile: e[d, s] = sigmoid(a_dst[d] + a_src[s]).
    # Elementwise work on the [TM, Np] tile is done in bf16 (halves VPU/EUP work
    # on v6e/v7x; v5e upconverts internally, still correct).
    z = a_dst_ref[...].astype(jnp.bfloat16) + a_src_ref[...].astype(jnp.bfloat16)  # [TM, Np]
    e = jax.nn.sigmoid(z)                                                          # [TM, Np]

    # Gate by the adjacency (streamed as int8 {0,1}, upcast in-register) and
    # aggregate neighbor features on the MXU with f32 accumulation.
    gated = e * adj_ref[...].astype(jnp.bfloat16)                                  # [TM, Np]
    f = jnp.dot(gated, x_src_ref[...], preferred_element_type=jnp.float32)         # [TM, Dp]

    # fc(cat([f, x])) as a single K = 2*Dp matmul against the stacked weight.
    fx = jnp.concatenate([f.astype(jnp.bfloat16), x_dst_ref[...]], axis=1)         # [TM, 2Dp]
    out = jnp.dot(fx, wf_ref[...], preferred_element_type=jnp.float32)             # [TM, OUTp]
    o_ref[...] = out.astype(o_ref.dtype)


def sage_layer_forward(x, adj, w_attn, w_fc, *, tile_rows=256):
    """x: [N, in_dim] f32, adj: [N, N] with adj[d, s] = 1 iff edge s->d (values {0,1}),
    w_attn: attn_fc.weight [1, 2*in_dim], w_fc: fc.weight [out_dim, 2*in_dim]."""
    N, D = x.shape
    out_dim = w_fc.shape[0]
    assert adj.shape == (N, N)
    assert w_attn.shape[1] == 2 * D and w_fc.shape[1] == 2 * D

    # ---- static tiling / padding decisions (host side) ----
    ntiles = max(1, _cdiv(N, tile_rows))
    TM = _round_up(_cdiv(N, ntiles), 32)        # 32-aligned: safe for int8/bf16 tiles
    N_pad = TM * _cdiv(N, TM)                   # dst AND src node count, multiple of TM
    D_pad = _round_up(D, 128)                   # lane-dense features
    OUT_pad = _round_up(out_dim, 128)           # lane-dense (unmasked) output stores
    grid = (N_pad // TM,)

    # ---- pad / retype inputs (zero padding contributes nothing) ----
    x_pad = jnp.zeros((N_pad, D_pad), jnp.float32).at[:N, :D].set(x.astype(jnp.float32))
    x_bf = x_pad.astype(jnp.bfloat16)
    adj_i8 = jnp.zeros((N_pad, N_pad), jnp.int8).at[:N, :N].set(adj.astype(jnp.int8))

    # attn_fc(cat([h_src, h_dst])) = h_src @ Wa[:, :D].T + h_dst @ Wa[:, D:].T (no bias).
    # These per-node [N, 1] projections are tiny and grid-invariant, so they are
    # computed once here (one fused [Dp, 2] matmul) instead of per destination tile.
    wa_fused = jnp.stack([w_attn[0, :D], w_attn[0, D:]], axis=1).astype(jnp.float32)  # [D, 2]
    wa_pad = jnp.zeros((D_pad, 2), jnp.float32).at[:D, :].set(wa_fused)
    a_both = x_pad @ wa_pad                                                           # [Np, 2]
    a_src_row = a_both[:, 0:1].T                                                      # [1, Np]
    a_dst_col = a_both[:, 1:2]                                                        # [Np, 1]

    # Stack the two fc halves into one right-multiply weight: rows [0:D) act on f,
    # rows [D_pad:D_pad+D) act on x.
    wf_pad = jnp.zeros((2 * D_pad, OUT_pad), jnp.float32)
    wf_pad = wf_pad.at[:D, :out_dim].set(w_fc[:, :D].T.astype(jnp.float32))
    wf_pad = wf_pad.at[D_pad:D_pad + D, :out_dim].set(w_fc[:, D:].T.astype(jnp.float32))
    wf_bf = wf_pad.astype(jnp.bfloat16)

    # ---- VMEM budget & cost estimate ----
    vmem_need = (2 * TM * N_pad * 1            # double-buffered int8 adjacency tiles
                 + N_pad * D_pad * 2           # resident bf16 X (source features)
                 + 2 * TM * D_pad * 2          # bf16 X tiles (destination features)
                 + 2 * D_pad * OUT_pad * 2     # stacked fc weight (bf16)
                 + 2 * TM * OUT_pad * 4        # f32 output tiles
                 + N_pad * 4 + 2 * TM * 4)     # attention scalars
    vmem_limit = int(min(max(2 * vmem_need, 32 * 1024 * 1024), 64 * 1024 * 1024))

    cost = pl.CostEstimate(
        flops=2 * N_pad * N_pad * D_pad + 2 * N_pad * (2 * D_pad) * OUT_pad,
        transcendentals=N_pad * N_pad,
        bytes_accessed=(N_pad * N_pad * 1 + 2 * N_pad * D_pad * 2
                        + 2 * D_pad * OUT_pad * 2 + N_pad * OUT_pad * 4
                        + N_pad * 4 * 2),
    )

    out_pad = pl.pallas_call(
        _sage_kernel,
        out_shape=jax.ShapeDtypeStruct((N_pad, OUT_pad), jnp.float32),
        grid=grid,
        in_specs=[
            pl.BlockSpec((TM, N_pad), lambda i: (i, 0)),          # adjacency tile (streamed)
            pl.BlockSpec((1, N_pad), lambda i: (0, 0)),           # a_src row (resident)
            pl.BlockSpec((TM, 1), lambda i: (i, 0)),              # a_dst for this dst tile
            pl.BlockSpec((N_pad, D_pad), lambda i: (0, 0)),       # X as source feats (resident)
            pl.BlockSpec((TM, D_pad), lambda i: (i, 0)),          # X rows of this dst tile
            pl.BlockSpec((2 * D_pad, OUT_pad), lambda i: (0, 0)), # stacked fc weight (resident)
        ],
        out_specs=pl.BlockSpec((TM, OUT_pad), lambda i: (i, 0)),
        compiler_params=pltpu.CompilerParams(
            dimension_semantics=("parallel",),
            vmem_limit_bytes=vmem_limit,
        ),
        cost_estimate=cost,
    )(adj_i8, a_src_row, a_dst_col, x_bf, x_bf, wf_bf)

    return out_pad[:N, :out_dim].astype(x.dtype)


def _reference(x, adj, w_attn, w_fc):
    # Pure-JAX f32 reference mirroring the DGL message passing.
    D = x.shape[1]
    a_src = x @ w_attn[:, :D].T           # [N, 1]
    a_dst = x @ w_attn[:, D:].T           # [N, 1]
    e = jax.nn.sigmoid(a_dst + a_src.T)   # [N_dst, N_src]
    f = (adj * e) @ x                     # [N, D]
    return jnp.concatenate([f, x], axis=1) @ w_fc.T


def _run_case(key, N, dim):
    # Note: the PyTorch module's attn_fc is Linear(2*out_dim, 1) applied to a
    # 2*in_dim vector, which only type-checks when in_dim == out_dim.
    kx, kadj, kwa, kwf = jax.random.split(key, 4)
    x = jax.random.normal(kx, (N, dim), dtype=jnp.float32)

    # Deterministic graph: ring (i -> i+1) plus random extra edges, adj[dst, src].
    ring = jnp.zeros((N, N), jnp.float32).at[(jnp.arange(N) + 1) % N, jnp.arange(N)].set(1.0)
    extra = (jax.random.uniform(kadj, (N, N)) < 0.25).astype(jnp.float32)
    adj = jnp.clip(ring + extra, 0.0, 1.0)

    w_attn = 0.1 * jax.random.normal(kwa, (1, 2 * dim), dtype=jnp.float32)  # attn_fc.weight
    w_fc = 0.1 * jax.random.normal(kwf, (dim, 2 * dim), dtype=jnp.float32)  # fc.weight

    out = jax.block_until_ready(sage_layer_forward(x, adj, w_attn, w_fc))
    ref = _reference(x, adj, w_attn, w_fc)
    assert out.shape == ref.shape, (out.shape, ref.shape)
    # bf16 MXU inputs with f32 accumulation -> compare with a bf16-appropriate bound.
    err = jnp.max(jnp.abs(out - ref)) / jnp.maximum(jnp.max(jnp.abs(ref)), 1e-6)
    assert float(err) < 2e-2, f"Pallas output mismatch vs reference (rel-max err {float(err)})"


if __name__ == "__main__":
    key = jax.random.PRNGKey(0)
    k1, k2 = jax.random.split(key)
    _run_case(k1, N=8, dim=32)      # tiny graph, single tile, heavy padding path
    _run_case(k2, N=300, dim=48)    # multi-tile grid (exercises dst-row pipelining)
    print("KERNEL_OK")
</pallas_src>

<mosaic_0001>
module attributes {stable_mosaic.version = 11 : i64} {
  func.func @_sage_kernel(%arg0: i32, %arg1: memref<32x32xi8, #tpu.memory_space<vmem>>, %arg2: memref<1x32xf32, #tpu.memory_space<vmem>>, %arg3: memref<32x1xf32, #tpu.memory_space<vmem>>, %arg4: memref<32x128xbf16, #tpu.memory_space<vmem>>, %arg5: memref<32x128xbf16, #tpu.memory_space<vmem>>, %arg6: memref<256x128xbf16, #tpu.memory_space<vmem>>, %arg7: memref<32x128xf32, #tpu.memory_space<vmem>>) attributes {dimension_semantics = [#tpu.dimension_semantics<parallel>], iteration_bounds = array<i64: 1>, scalar_prefetch = 0 : i64, scratch_operands = 0 : i64, tpu.core_type = #tpu.core_type<tc>, window_params = [{transform_indices = @transform_0, window_bounds = array<i64: 32, 32>}, {pipeline_mode = #tpu.pipeline_mode<synchronous>, transform_indices = @transform_1, window_bounds = array<i64: 1, 32>}, {transform_indices = @transform_2, window_bounds = array<i64: 32, 1>}, {pipeline_mode = #tpu.pipeline_mode<synchronous>, transform_indices = @transform_3, window_bounds = array<i64: 32, 128>}, {transform_indices = @transform_4, window_bounds = array<i64: 32, 128>}, {pipeline_mode = #tpu.pipeline_mode<synchronous>, transform_indices = @transform_5, window_bounds = array<i64: 256, 128>}, {transform_indices = @transform_6, window_bounds = array<i64: 32, 128>}]} {
    %c0 = arith.constant 0 : index
    %c0_0 = arith.constant 0 : index
    %0 = vector.load %arg3[%c0, %c0_0] : memref<32x1xf32, #tpu.memory_space<vmem>>, vector<32x1xf32>
    %1 = arith.truncf %0 : vector<32x1xf32> to vector<32x1xbf16>
    %c0_1 = arith.constant 0 : index
    %c0_2 = arith.constant 0 : index
    %2 = vector.load %arg2[%c0_1, %c0_2] : memref<1x32xf32, #tpu.memory_space<vmem>>, vector<1x32xf32>
    %3 = arith.truncf %2 : vector<1x32xf32> to vector<1x32xbf16>
    %4 = vector.broadcast %1 : vector<32x1xbf16> to vector<32x32xbf16>
    %5 = vector.broadcast %3 : vector<1x32xbf16> to vector<32x32xbf16>
    %6 = arith.addf %4, %5 : vector<32x32xbf16>
    %7 = arith.negf %6 : vector<32x32xbf16>
    %8 = math.exp %7 : vector<32x32xbf16>
    %cst = arith.constant 1.000000e+00 : bf16
    %9 = vector.broadcast %cst : bf16 to vector<32x32xbf16>
    %10 = arith.addf %9, %8 : vector<32x32xbf16>
    %11 = arith.divf %9, %10 : vector<32x32xbf16>
    %c0_3 = arith.constant 0 : index
    %c0_4 = arith.constant 0 : index
    %12 = vector.load %arg1[%c0_3, %c0_4] : memref<32x32xi8, #tpu.memory_space<vmem>>, vector<32x32xi8>
    %13 = arith.sitofp %12 : vector<32x32xi8> to vector<32x32xbf16>
    %14 = arith.mulf %11, %13 : vector<32x32xbf16>
    %c0_5 = arith.constant 0 : index
    %c0_6 = arith.constant 0 : index
    %15 = vector.load %arg4[%c0_5, %c0_6] : memref<32x128xbf16, #tpu.memory_space<vmem>>, vector<32x128xbf16>
    %cst_7 = arith.constant dense<0.000000e+00> : vector<32x128xf32>
    %16 = tpu.matmul %14, %15, %cst_7 {dimension_numbers = #tpu.dot_dimension_numbers<[1], [0], [0], [1], [0, 0, 1, 1], [], []>} : vector<32x32xbf16>, vector<32x128xbf16>, vector<32x128xf32> -> vector<32x128xf32>
    %17 = arith.truncf %16 : vector<32x128xf32> to vector<32x128xbf16>
    %c0_8 = arith.constant 0 : index
    %c0_9 = arith.constant 0 : index
    %18 = vector.load %arg5[%c0_8, %c0_9] : memref<32x128xbf16, #tpu.memory_space<vmem>>, vector<32x128xbf16>
    %19 = tpu.concatenate %17, %18 in 1 : vector<32x128xbf16>, vector<32x128xbf16> -> vector<32x256xbf16>
    %c0_10 = arith.constant 0 : index
    %c0_11 = arith.constant 0 : index
    %20 = vector.load %arg6[%c0_10, %c0_11] : memref<256x128xbf16, #tpu.memory_space<vmem>>, vector<256x128xbf16>
    %cst_12 = arith.constant dense<0.000000e+00> : vector<32x128xf32>
    %21 = tpu.matmul %19, %20, %cst_12 {dimension_numbers = #tpu.dot_dimension_numbers<[1], [0], [0], [1], [0, 0, 1, 1], [], []>} : vector<32x256xbf16>, vector<256x128xbf16>, vector<32x128xf32> -> vector<32x128xf32>
    %c0_13 = arith.constant 0 : index
    %c0_14 = arith.constant 0 : index
    %22 = vector.load %arg7[%c0_13, %c0_14] : memref<32x128xf32, #tpu.memory_space<vmem>>, vector<32x128xf32>
    tpu.vector_store %arg7[%c0_13, %c0_14], %21 {strides = array<i32>} : memref<32x128xf32, #tpu.memory_space<vmem>>, vector<32x128xf32>,
    return
  }
  func.func @transform_0(%arg0: i32) -> (i32, i32) {
    %c0_i32 = arith.constant 0 : i32
    %c0_i32_0 = arith.constant 0 : i32
    return %arg0, %c0_i32 : i32, i32
  }
  func.func @transform_1(%arg0: i32) -> (i32, i32) {
    %c0_i32 = arith.constant 0 : i32
    %c0_i32_0 = arith.constant 0 : i32
    %c0_i32_1 = arith.constant 0 : i32
    return %c0_i32, %c0_i32_0 : i32, i32
  }
  func.func @transform_2(%arg0: i32) -> (i32, i32) {
    %c0_i32 = arith.constant 0 : i32
    %c0_i32_0 = arith.constant 0 : i32
    return %arg0, %c0_i32 : i32, i32
  }
  func.func @transform_3(%arg0: i32) -> (i32, i32) {
    %c0_i32 = arith.constant 0 : i32
    %c0_i32_0 = arith.constant 0 : i32
    %c0_i32_1 = arith.constant 0 : i32
    return %c0_i32, %c0_i32_0 : i32, i32
  }
  func.func @transform_4(%arg0: i32) -> (i32, i32) {
    %c0_i32 = arith.constant 0 : i32
    %c0_i32_0 = arith.constant 0 : i32
    return %arg0, %c0_i32 : i32, i32
  }
  func.func @transform_5(%arg0: i32) -> (i32, i32) {
    %c0_i32 = arith.constant 0 : i32
    %c0_i32_0 = arith.constant 0 : i32
    %c0_i32_1 = arith.constant 0 : i32
    return %c0_i32, %c0_i32_0 : i32, i32
  }
  func.func @transform_6(%arg0: i32) -> (i32, i32) {
    %c0_i32 = arith.constant 0 : i32
    %c0_i32_0 = arith.constant 0 : i32
    return %arg0, %c0_i32 : i32, i32
  }
}

</mosaic_0001>

<bundles_post_ra>
// kernel: tpu_custom_call.1
= control target key start
LH: loop header
LB: loop body
LE: loop exit
PB: predicated region body
PF: predicated region fallthrough
CT: control target
= control target key end

     0   :  { %11 = vsyncpa [#allocation3], 0  ;;  %s673_s0 = inlined_call_operand.hbm [shape: s8[32,32], index: 0, kind: input, shape index: {}]   ;;  %s674_s1 = inlined_call_operand.vmem [shape: f32[1,32], index: 1, kind: input, shape index: {}]   ;;  %s675_s2 = inlined_call_operand.vmem [shape: f32[32,1], index: 2, kind: input, shape index: {}]   ;;  %s676_s3 = inlined_call_operand.vmem [shape: bf16[32,128], index: 3, kind: input, shape index: {}]   ;;  %s677_s4 = inlined_call_operand.vmem [shape: bf16[32,128], index: 4, kind: input, shape index: {}]   ;;  %s678_s5 = inlined_call_operand.hbm [shape: bf16[256,128], index: 5, kind: input, shape index: {}]   ;;  %s679_s6 = inlined_call_operand.hbm [shape: f32[32,128], index: 6, kind: output, shape index: {}]  }
   0x1   :  { %12 = vsyncpa [#allocation6], 0 }
   0x2   :  { %13 = vsyncpa [#allocation4], 0  ;;  %s560_s21 = smov [#allocation2]   ;;  %s561_s23 = smov [#allocation5]  }
   0x3   :  { %s20_s22 = sshll.u32 %s560_s21, 4  ;;  %s37_s24 = sshll.u32 %s561_s23, 4  ;;  %s21_s22 = int_to_ptr.vmem [resolvable:$true] %s20_s22  ;;  %s603_s24 = int_to_ptr.vmem [resolvable:$true] %s37_s24 }
   0x4   :  { %s488_s27 = scalar_lea.hbm %s673_s0, 128 }
   0x5   :  { %p489_p0 = scmp.ne.s32.totalorder %s673_s0, %s488_s27  ;;  %p492_p1 = scmp.lt.u32.totalorder %s488_s27, %s673_s0 }
   0x7   :  { %p494_p2 = pnand %p492_p1, %p489_p0 }
   0x9   :  { %497 = shalt.err (!%p494_p2)
}
   0xa   :  { %s498_s8 = scalar_lea.vmem %s21_s22, 128  ;;  %p503_p4 = scmp.lt.s32.totalorder %s21_s22, %s21_s22 }
   0xb   :  { %p499_p3 = scmp.ne.s32.totalorder %s21_s22, %s498_s8  ;;  %p504_p5 = scmp.lt.s32.totalorder %s498_s8, %s498_s8 }
   0xd   :  { %p505_p6 = por %p504_p5, %p503_p4 }
   0xf   :  { %p506_p7 = pnand %p505_p6, %p499_p3 }
  0x11   :  { %509 = shalt.err (!%p506_p7)
}
  0x12   :  { %23 = dma.hbm_to_vmem [thread:$0]  %s673_s0, 128, %s21_s22, [#allocation3]  }
  0x13   :  { %s510_s13 = scalar_lea.hbm %s678_s5, 2048 }
  0x14   :  { %p511_p8 = scmp.ne.s32.totalorder %s678_s5, %s510_s13  ;;  %p514_p9 = scmp.lt.u32.totalorder %s510_s13, %s678_s5 }
  0x16   :  { %p516_p10 = pnand %p514_p9, %p511_p8 }
  0x18   :  { %519 = shalt.err (!%p516_p10)
}
  0x19   :  { %s520_s18 = scalar_lea.vmem %s603_s24, 2048  ;;  %p525_p12 = scmp.lt.s32.totalorder %s603_s24, %s603_s24 }
  0x1a   :  { %p521_p11 = scmp.ne.s32.totalorder %s603_s24, %s520_s18  ;;  %p526_p13 = scmp.lt.s32.totalorder %s520_s18, %s520_s18 }
  0x1c   :  { %p527_p0 = por %p526_p13, %p525_p12 }
  0x1e   :  { %p528_p1 = pnand %p527_p0, %p521_p11 }
  0x20   :  { %531 = shalt.err (!%p528_p1)
}
  0x21   :  { %s562_s0 = smov 64   ;;  %s563_s19 = smov 4  }
  0x22   :  { %43 = dma.hbm_to_vmem [thread:$0]  %s678_s5, 2048, %s603_s24, [#allocation6], %s562_s0, %s562_s0, %s563_s19  }
  0x23   :  { %554 = dma.done.wait [#allocation3], 128  }
  0x24   :  { %555 = vsyncadd [#allocation3], 4294967168 }
  0x25   :  { %556 = dma.done.wait [#allocation6], 2048  }
  0x26   :  { %557 = vsyncadd [#allocation6], 4294965248  ;;  %v564_v0 = vmov 0   ;;  %v52_v1 = vld [vmem:[%s675_s2] sm:$0xff]  ;;  %v53_v2 = vld [vmem:[%s675_s2 + $0x8] sm:$0xff]  ;;  %v73_v23 = vlaneseq  ;;  %vm114_vm0 = vcmask 261120  }
  0x27   :  { %459 = vset.pattern.permute.xlu0 %v564_v0  ;;  %v54_v3 = vld [vmem:[%s675_s2 + $0x10] sm:$0xff]  ;;  %v56_v4 = vpack.c.bf16 %v53_v2, %v52_v1  ;;  %v55_v5 = vld [vmem:[%s675_s2 + $0x18] sm:$0xff]  ;;  %v460_v7 = vld [vmem:[%s676_s3] sm:$0xff]   ;;  %s565_s12 = smov [#allocation7]  }
  0x28   :  { %v57_v6 = vpack.c.bf16 %v55_v5, %v54_v3  ;;  %443 = vmatprep.subr.bf16.mxu0 %v460_v7  ;;  %v461_v8 = vld [vmem:[%s676_s3 + $0x8] sm:$0xff]   ;;  %v464_v11 = vld [vmem:[#allocation5 + $0x48] sm:$0xff]   ;;  %v466_v13 = vld [vmem:[#allocation5 + $0x50] sm:$0xff]   ;;  %v74_v26 = vshrl.u32 %v73_v23, 7  ;;  %s374_s13 = sshll.u32 %s565_s12, 4  ;;  %s375_s13 = int_to_ptr.vmem [resolvable:$true] %s374_s13 }
  0x29   :  { %62 = vperm.xlu0 %459, %v56_v4   ;;  %444 = vmatpush3.bf16.msra.mxu0 %v460_v7  ;;  %v462_v9 = vld [vmem:[#allocation5 + $0x40] sm:$0xff]   ;;  %v465_v12 = vld [vmem:[#allocation5 + $0x8] sm:$0xff]   ;;  %v467_v14 = vld [vmem:[#allocation5 + $0x10] sm:$0xff]   ;;  %p537_p3 = scmp.lt.s32.totalorder %s375_s13, %s375_s13 }
  0x2a   :  { %445 = vmatprep.subr.bf16.mxu0 %v461_v8  ;;  %v463_v10 = vld [vmem:[#allocation5] sm:$0xff]   ;;  %415 = vmatprep.subr.bf16.mxu1 %v462_v9  ;;  %v468_v15 = vld [vmem:[#allocation5 + $0x58] sm:$0xff]   ;;  %v472_v19 = vld [vmem:[#allocation5 + $0x68] sm:$0xff]   ;;  %v75_v28 = vsub.s32 0, %v74_v26 }
  0x2b   :  { %416 = vmatpush3.bf16.msra.mxu1 %v463_v10  ;;  %v469_v16 = vld [vmem:[#allocation5 + $0x18] sm:$0xff]   ;;  %v470_v17 = vld [vmem:[#allocation5 + $0x60] sm:$0xff]   ;;  %v473_v20 = vld [vmem:[#allocation5 + $0x28] sm:$0xff]  }
  0x2c   :  { %417 = vmatprep.subr.bf16.mxu1 %v464_v11  ;;  %v471_v18 = vld [vmem:[#allocation5 + $0x20] sm:$0xff]   ;;  %v474_v21 = vld [vmem:[#allocation5 + $0x70] sm:$0xff]   ;;  %v58_v24 = vld [vmem:[%s674_s1] sm:$0x1] }
  0x2d   :  { %67 = vperm.xlu0 %459, %v57_v6   ;;  %446 = vmatpush3.bf16.msra.mxu0 %v461_v8  ;;  %v475_v22 = vld [vmem:[#allocation5 + $0x30] sm:$0xff]   ;;  %v59_v25 = vpack.c.bf16 %v58_v24, %v58_v24  ;;  %v93_v40 = vld [vmem:[#allocation2] sm:$0xff]  ;;  %v479_v57 = vld [vmem:[%s677_s4 + $0x8] sm:$0xff]  }
  0x2e   :  { %v94_v41 = vunpack.c.l.s8.bf16 %v93_v40  ;;  %v95_v44 = vunpack.c.h.s8.bf16 %v93_v40  ;;  %v476_v49 = vld [vmem:[#allocation5 + $0x78] sm:$0xff]  }
  0x2f   :  { %418 = vmatpush3.bf16.msra.mxu1 %v465_v12  ;;  %v71_v27 = vpack.i.b16 %v59_v25, %v59_v25  ;;  %v477_v50 = vld [vmem:[#allocation5 + $0x38] sm:$0xff]  }
  0x30   :  { %419 = vmatprep.subr.bf16.mxu1 %v466_v13  ;;  %v478_v51 = vld [vmem:[%s677_s4] sm:$0xff]   ;;  %s532_s4 = scalar_lea.vmem %s375_s13, 512 }
  0x31   :  { %v76_v29 = vrot.slane %v71_v27, %v75_v28  ;;  %348 = vmatprep.mubr.bf16.mxu1 %v478_v51  ;;  %p533_p2 = scmp.ne.s32.totalorder %s375_s13, %s532_s4  ;;  %p538_p4 = scmp.lt.s32.totalorder %s532_s4, %s532_s4 }
  0x33   :  { %420 = vmatpush3.bf16.msra.mxu1 %v467_v14  ;;  %p539_p5 = por %p538_p4, %p537_p3 }
  0x34   :  { %421 = vmatprep.subr.bf16.mxu1 %v468_v15 }
  0x35   :  { %p540_p6 = pnand %p539_p5, %p533_p2 }
  0x37   :  { %422 = vmatpush3.bf16.msra.mxu1 %v469_v16 }
  0x38   :  { %423 = vmatprep.subr.bf16.mxu1 %v470_v17 }
  0x3b   :  { %424 = vmatpush3.bf16.msra.mxu1 %v471_v18 }
  0x3c   :  { %425 = vmatprep.subr.bf16.mxu1 %v472_v19 }
  0x3f   :  { %426 = vmatpush3.bf16.msra.mxu1 %v473_v20 }
  0x40   :  { %427 = vmatprep.subr.bf16.mxu1 %v474_v21 }
  0x43   :  { %428 = vmatpush3.bf16.msra.mxu1 %v475_v22 }
  0x44   :  { %429 = vmatprep.subr.bf16.mxu1 %v476_v49 }
  0x47   :  { %430 = vmatpush3.bf16.msra.mxu1 %v477_v50 }
  0xa8   :  { %v63_v30 = vpop.permute.xlu0 %62 }
  0xa9   :  { %v77_v31 = vadd.bf16 %v76_v29, %v63_v30 }
  0xab   :  { %v387_v32 = vmul.bf16 3216621497, %v77_v31 }
  0xac   :  { %v68_v33 = vpop.permute.xlu0 %67 }
  0xad   :  { %480 = vpow.bf16 %v387_v32  ;;  %v78_v34 = vadd.bf16 %v76_v29, %v68_v33 }
  0xaf   :  { %v388_v35 = vmul.bf16 3216621497, %v78_v34 }
  0xb1   :  { %482 = vpow.bf16 %v388_v35 }
  0xb8   :  { %v481_v36 = vpop.eup %480 }
  0xb9   :  { %v87_v37 = vadd.bf16 1065369472, %v481_v36 }
  0xbb   :  { %484 = vrcp.bf16 %v87_v37 }
  0xbc   :  { %v483_v38 = vpop.eup %482 }
  0xbd   :  { %v88_v39 = vadd.bf16 1065369472, %v483_v38 }
  0xbf   :  { %486 = vrcp.bf16 %v88_v39 }
  0xc6   :  { %v485_v42 = vpop.eup %484 }
  0xc7   :  { %v90_v43 = vmul.bf16 1065369472, %v485_v42 }
  0xc9   :  { %v96_v45 = vmul.bf16 %v94_v41, %v90_v43 }
  0xca   :  { %v487_v46 = vpop.eup %486 }
  0xcb   :  { %v92_v47 = vmul.bf16 1065369472, %v487_v46  ;;  %447 = vmatprep.mubr.msk.bf16.mxu0 %vm114_vm0, %v96_v45 }
  0xcd   :  { %v97_v48 = vmul.bf16 %v95_v44, %v92_v47 }
  0xcf   :  { %448 = vmatmul.mubr.msk.bf16.vlgmr.msra.gmra.mrb[0].mxu0 %vm114_vm0, %v97_v48 }
 0x1a2   :  { %v449_v52 = vpop.f32.mrb[0].mxu0 }
 0x1a3   :  { %v155_v53 = vpop.f32.mrb[1].mxu0 }
 0x1a4   :  { %v450_v54 = vpop.f32.mrb[2].mxu0 }
 0x1a5   :  { %v171_v55 = vpack.c.bf16 %v450_v54, %v449_v52  ;;  %v158_v56 = vpop.f32.mrb[3].mxu0 }
 0x1a6   :  { %v170_v58 = vpack.c.bf16 %v158_v56, %v155_v53 }
 0x1a8   :  { %349 = vmatmul.mubr.bf16.vlgmr.msra.gmra.mrb[0].mxu1 %v170_v58 }
 0x1a9   :  { %356 = vmatprep.mubr.bf16.mxu1 %v479_v57 }
 0x1b0   :  { %357 = vmatmul.mubr.bf16.gmra.mrb[4].mxu1 %v171_v55 }
 0x27b   :  { %v431_v59 = vpop.f32.mrb[0].mxu1 }
 0x27c   :  { %v432_v60 = vpop.f32.mrb[1].mxu1 }
 0x27d   :  { %v433_v61 = vadd.f32 %v432_v60, %v431_v59  ;;  %v434_v62 = vpop.f32.mrb[2].mxu1 }
 0x27e   :  { %v435_v63 = vpop.f32.mrb[3].mxu1 }
 0x27f   :  { %365 = vst [vmem:[#allocation7] sm:$0xff] %v433_v61  ;;  %v436_v0 = vadd.f32 %v435_v63, %v434_v62 }
 0x281   :  { %366 = vst [vmem:[#allocation7 + $0x8] sm:$0xff] %v436_v0 }
 0x283   :  { %v437_v1 = vpop.f32.mrb[4].mxu1 }
 0x284   :  { %v438_v2 = vpop.f32.mrb[5].mxu1 }
 0x285   :  { %v439_v3 = vadd.f32 %v438_v2, %v437_v1  ;;  %v440_v4 = vpop.f32.mrb[6].mxu1 }
 0x286   :  { %v441_v5 = vpop.f32.mrb[7].mxu1 }
 0x287   :  { %367 = vst [vmem:[#allocation7 + $0x10] sm:$0xff] %v439_v3  ;;  %v442_v6 = vadd.f32 %v441_v5, %v440_v4 }
 0x289   :  { %368 = vst [vmem:[#allocation7 + $0x18] sm:$0xff] %v442_v6 }
 0x28a   :  { %543 = shalt.err (!%p540_p6)
}
 0x28b   :  { %s544_s16 = scalar_lea.hbm %s679_s6, 512 }
 0x28c   :  { %p545_p7 = scmp.ne.s32.totalorder %s679_s6, %s544_s16  ;;  %p548_p8 = scmp.lt.u32.totalorder %s544_s16, %s679_s6 }
 0x28e   :  { %p550_p9 = pnand %p548_p8, %p545_p7 }
 0x290   :  { %553 = shalt.err (!%p550_p9)
}
 0x291   :  { %s566_s20 = smov 128   ;;  %s567_s21 = smov 8  }
 0x292   :  { %380 = dma.vmem_to_hbm [thread:$0]  %s375_s13, 512, %s679_s6, [#allocation4], %s566_s20, %s566_s20, %s567_s21  }
 0x293   :  { %558 = dma.done.wait [#allocation4], 512  }
 0x294   :  { %559 = vsyncadd [#allocation4], 4294966784 }
 0x295   :  { %384 = vsyncpa [#allocation3], 1 }
 0x296   :  { %385 = vsyncpa [#allocation6], 1 }
 0x297   :  { %386 = vsyncpa [#allocation4], 1 }

</bundles_post_ra>
